<compile_context>
chip_gen: v7x
topology: tpu7x:2x2x1
jax: 0.10.0
libtpu: 0.0.40
codegen_flags: <defaults>
</compile_context>

<pallas_src>
import functools

import jax
import jax.numpy as jnp
from jax.experimental import pallas as pl
from jax.experimental.pallas import tpu as pltpu

HIDDEN = 128   # fc1/fc2 width from the PyTorch module
LANE = 128     # TPU lane width


def _round_up(x, m):
    return (x + m - 1) // m * m


def pack_params(params, in_dim, n_actions):
    """Pack params into (head_f32, w_slab_bf16), built once per parameter update.

    head_f32 : (round_up(in_dim, 8) + 8, 128) f32  = [w1 ; b1 ; b2 ; b3]  (tiny, exact)
    w_slab   : (256, 128) bf16                     = [w2 ; w3 (zero-padded columns)]
    """
    assert 1 <= in_dim <= LANE, "kernel packs w1 into a 128-lane slab (in_dim <= 128)"
    assert 1 <= n_actions <= LANE, "kernel packs w3 into a 128-lane slab (n_actions <= 128)"
    w_rows = _round_up(in_dim, 8)

    head = jnp.zeros((w_rows + 8, LANE), jnp.float32)
    head = head.at[:in_dim, :HIDDEN].set(params["w1"])
    head = head.at[w_rows + 0, :HIDDEN].set(params["b1"].reshape(-1))
    head = head.at[w_rows + 1, :HIDDEN].set(params["b2"].reshape(-1))
    head = head.at[w_rows + 2, :n_actions].set(params["b3"].reshape(-1))

    slab = jnp.zeros((2 * HIDDEN, LANE), jnp.float32)
    slab = slab.at[:HIDDEN, :HIDDEN].set(params["w2"])
    slab = slab.at[HIDDEN:, :n_actions].set(params["w3"])
    return head, slab.astype(jnp.bfloat16)


def policy_mlp_kernel(x_ref, head_ref, w_ref, o_ref, *, in_dim, w_rows, n_actions):
    """relu(x@W1+b1) -> relu(.@W2+b2) -> .@W3+b3 on one batch tile.

    x_ref    : (tile_b, in_dim)    f32  state tile (streams over the grid)
    head_ref : (w_rows+8, 128)     f32  [w1; b1; b2; b3]   (VMEM-resident)
    w_ref    : (256, 128)          bf16 [w2; w3]           (VMEM-resident)
    o_ref    : (tile_b, n_actions) f32  logits (lane-narrow store, 32x fewer HBM bytes)
    """
    x = x_ref[...].astype(jnp.bfloat16)                     # bf16 cast on-chip (VPU)
    w1 = head_ref[:in_dim, :].astype(jnp.bfloat16)
    b1 = head_ref[w_rows + 0:w_rows + 1, :]                 # f32 biases
    b2 = head_ref[w_rows + 1:w_rows + 2, :]
    b3 = head_ref[w_rows + 2:w_rows + 3, :]
    w2 = w_ref[:HIDDEN, :]
    w3 = w_ref[HIDDEN:, :]

    h1 = jnp.dot(x, w1, preferred_element_type=jnp.float32) + b1      # f32 accumulate
    h1 = jnp.maximum(h1, 0.0).astype(jnp.bfloat16)
    h2 = jnp.dot(h1, w2, preferred_element_type=jnp.float32) + b2
    h2 = jnp.maximum(h2, 0.0).astype(jnp.bfloat16)
    logits = jnp.dot(h2, w3, preferred_element_type=jnp.float32) + b3  # (tile_b, 128)
    o_ref[...] = logits[:, :n_actions]                                 # narrow writeback


def _choose_tile_b(b_pad8):
    """Batch tile: big enough to amortize per-step overhead (>=256), small enough that
    large rollout batches still span ~4 grid steps (v7x has 2 TensorCores) and VMEM
    stays far below the scoped default even on v7x (64 MiB physical)."""
    t = _round_up(pl.cdiv(b_pad8, 4), 8)     # aim for ~4 grid steps on big batches
    t = max(256, min(t, 1024))               # clamp per perf review
    return min(t, b_pad8)                    # never larger than the (padded) batch


@functools.partial(jax.jit, static_argnames=("n_actions",))
def policy_network_forward(state, head_params, w_slab, *, n_actions):
    """Batched PolicyNetwork forward: (B, in_dim) f32 -> (B, n_actions) f32 logits."""
    state = jnp.atleast_2d(state).astype(jnp.float32)
    B, in_dim = state.shape
    w_rows = _round_up(in_dim, 8)
    head_rows = head_params.shape[0]

    b_pad = _round_up(max(B, 1), 8)                    # pad only to the sublane multiple
    x = state if b_pad == B else jnp.pad(state, ((0, b_pad - B), (0, 0)))

    tile_b = _choose_tile_b(b_pad)
    grid = (pl.cdiv(b_pad, tile_b),)                   # partial trailing tile is masked

    kernel = functools.partial(policy_mlp_kernel, in_dim=in_dim, w_rows=w_rows,
                               n_actions=n_actions)

    out = pl.pallas_call(
        kernel,
        out_shape=jax.ShapeDtypeStruct((b_pad, n_actions), jnp.float32),
        grid=grid,
        in_specs=[
            pl.BlockSpec((tile_b, in_dim), lambda i: (i, 0)),    # state tile streams
            pl.BlockSpec((head_rows, LANE), lambda i: (0, 0)),   # f32 head: resident
            pl.BlockSpec((2 * HIDDEN, LANE), lambda i: (0, 0)),  # bf16 w2/w3: resident
        ],
        out_specs=pl.BlockSpec((tile_b, n_actions), lambda i: (i, 0)),
        compiler_params=pltpu.CompilerParams(
            dimension_semantics=("parallel",)),                  # shard tiles across TCs
    )(x, head_params, w_slab)

    return out if b_pad == B else out[:B]


def init_params(key, in_dim, hidden, n_actions):
    """PyTorch-Linear-style init: U(-1/sqrt(fan_in), 1/sqrt(fan_in)), f32 at rest."""
    ks = jax.random.split(key, 6)

    def linear(kw, kb, fan_in, fan_out):
        bound = 1.0 / jnp.sqrt(jnp.float32(fan_in))
        w = jax.random.uniform(kw, (fan_in, fan_out), jnp.float32, -bound, bound)
        b = jax.random.uniform(kb, (1, fan_out), jnp.float32, -bound, bound)
        return w, b

    w1, b1 = linear(ks[0], ks[1], in_dim, hidden)
    w2, b2 = linear(ks[2], ks[3], hidden, hidden)
    w3, b3 = linear(ks[4], ks[5], hidden, n_actions)
    return {"w1": w1, "b1": b1, "w2": w2, "b2": b2, "w3": w3, "b3": b3}


def _ref_forward(state, params):
    """Pure-JAX reference mirroring the kernel numerics (bf16 MXU inputs, f32 bias/acc)."""
    def lin(x, w, b):
        return jnp.dot(x.astype(jnp.bfloat16), w.astype(jnp.bfloat16),
                       preferred_element_type=jnp.float32) + b

    h1 = jnp.maximum(lin(state, params["w1"], params["b1"]), 0.0)
    h2 = jnp.maximum(lin(h1, params["w2"], params["b2"]), 0.0)
    return lin(h2, params["w3"], params["b3"])


if __name__ == "__main__":
    # LunarLander-v2: observation dim = 8, n_actions = 4.
    IN_DIM, N_ACTIONS = 8, 4

    key = jax.random.PRNGKey(0)
    k_params, k_state = jax.random.split(key)
    params = init_params(k_params, IN_DIM, HIDDEN, N_ACTIONS)
    head, w_slab = pack_params(params, IN_DIM, N_ACTIONS)   # packed once

    # Small per-env-step batch, a batch needing sublane padding, and a multi-tile
    # rollout batch with a partial trailing tile (exercises grid sharding + masking).
    for B in (2, 200, 520):
        state = jax.random.normal(jax.random.fold_in(k_state, B), (B, IN_DIM), jnp.float32)
        logits = policy_network_forward(state, head, w_slab, n_actions=N_ACTIONS)
        logits = jax.block_until_ready(logits)

        ref = _ref_forward(state, params)
        assert logits.shape == (B, N_ACTIONS)
        assert bool(jnp.all(jnp.isfinite(logits)))
        assert jnp.allclose(logits, ref, atol=3e-2, rtol=3e-2), (
            f"mismatch at B={B}: max abs diff {float(jnp.max(jnp.abs(logits - ref)))}")

    print("KERNEL_OK")
</pallas_src>

<mosaic_0001>
module attributes {stable_mosaic.version = 11 : i64} {
  func.func @policy_mlp_kernel(%arg0: i32, %arg1: memref<8x8xf32, #tpu.memory_space<vmem>>, %arg2: memref<16x128xf32, #tpu.memory_space<vmem>>, %arg3: memref<256x128xbf16, #tpu.memory_space<vmem>>, %arg4: memref<8x4xf32, #tpu.memory_space<vmem>>) attributes {dimension_semantics = [#tpu.dimension_semantics<parallel>], iteration_bounds = array<i64: 1>, scalar_prefetch = 0 : i64, scratch_operands = 0 : i64, tpu.core_type = #tpu.core_type<tc>, window_params = [{transform_indices = @transform_0, window_bounds = array<i64: 8, 8>}, {pipeline_mode = #tpu.pipeline_mode<synchronous>, transform_indices = @transform_1, window_bounds = array<i64: 16, 128>}, {pipeline_mode = #tpu.pipeline_mode<synchronous>, transform_indices = @transform_2, window_bounds = array<i64: 256, 128>}, {transform_indices = @transform_3, window_bounds = array<i64: 8, 4>}]} {
    %c0 = arith.constant 0 : index
    %c0_0 = arith.constant 0 : index
    %0 = vector.load %arg1[%c0, %c0_0] : memref<8x8xf32, #tpu.memory_space<vmem>>, vector<8x8xf32>
    %1 = arith.truncf %0 : vector<8x8xf32> to vector<8x8xbf16>
    %c0_1 = arith.constant 0 : index
    %c0_2 = arith.constant 0 : index
    %2 = vector.load %arg2[%c0_1, %c0_2] : memref<16x128xf32, #tpu.memory_space<vmem>>, vector<8x128xf32>
    %3 = arith.truncf %2 : vector<8x128xf32> to vector<8x128xbf16>
    %c8 = arith.constant 8 : index
    %c0_3 = arith.constant 0 : index
    %4 = vector.load %arg2[%c8, %c0_3] : memref<16x128xf32, #tpu.memory_space<vmem>>, vector<1x128xf32>
    %c9 = arith.constant 9 : index
    %c0_4 = arith.constant 0 : index
    %5 = vector.load %arg2[%c9, %c0_4] : memref<16x128xf32, #tpu.memory_space<vmem>>, vector<1x128xf32>
    %c10 = arith.constant 10 : index
    %c0_5 = arith.constant 0 : index
    %6 = vector.load %arg2[%c10, %c0_5] : memref<16x128xf32, #tpu.memory_space<vmem>>, vector<1x128xf32>
    %c0_6 = arith.constant 0 : index
    %c0_7 = arith.constant 0 : index
    %7 = vector.load %arg3[%c0_6, %c0_7] : memref<256x128xbf16, #tpu.memory_space<vmem>>, vector<128x128xbf16>
    %c128 = arith.constant 128 : index
    %c0_8 = arith.constant 0 : index
    %8 = vector.load %arg3[%c128, %c0_8] : memref<256x128xbf16, #tpu.memory_space<vmem>>, vector<128x128xbf16>
    %cst = arith.constant dense<0.000000e+00> : vector<8x128xf32>
    %9 = tpu.matmul %1, %3, %cst {dimension_numbers = #tpu.dot_dimension_numbers<[1], [0], [0], [1], [0, 0, 1, 1], [], []>} : vector<8x8xbf16>, vector<8x128xbf16>, vector<8x128xf32> -> vector<8x128xf32>
    %10 = vector.broadcast %4 : vector<1x128xf32> to vector<8x128xf32>
    %11 = arith.addf %9, %10 : vector<8x128xf32>
    %cst_9 = arith.constant 0.000000e+00 : f32
    %12 = vector.broadcast %cst_9 : f32 to vector<8x128xf32>
    %13 = arith.maximumf %11, %12 : vector<8x128xf32>
    %14 = arith.truncf %13 : vector<8x128xf32> to vector<8x128xbf16>
    %cst_10 = arith.constant dense<0.000000e+00> : vector<8x128xf32>
    %15 = tpu.matmul %14, %7, %cst_10 {dimension_numbers = #tpu.dot_dimension_numbers<[1], [0], [0], [1], [0, 0, 1, 1], [], []>} : vector<8x128xbf16>, vector<128x128xbf16>, vector<8x128xf32> -> vector<8x128xf32>
    %16 = vector.broadcast %5 : vector<1x128xf32> to vector<8x128xf32>
    %17 = arith.addf %15, %16 : vector<8x128xf32>
    %cst_11 = arith.constant 0.000000e+00 : f32
    %18 = vector.broadcast %cst_11 : f32 to vector<8x128xf32>
    %19 = arith.maximumf %17, %18 : vector<8x128xf32>
    %20 = arith.truncf %19 : vector<8x128xf32> to vector<8x128xbf16>
    %cst_12 = arith.constant dense<0.000000e+00> : vector<8x128xf32>
    %21 = tpu.matmul %20, %8, %cst_12 {dimension_numbers = #tpu.dot_dimension_numbers<[1], [0], [0], [1], [0, 0, 1, 1], [], []>} : vector<8x128xbf16>, vector<128x128xbf16>, vector<8x128xf32> -> vector<8x128xf32>
    %22 = vector.broadcast %6 : vector<1x128xf32> to vector<8x128xf32>
    %23 = arith.addf %21, %22 : vector<8x128xf32>
    %24 = vector.extract_strided_slice %23 {offsets = [0, 0], sizes = [8, 4], strides = [1, 1]} : vector<8x128xf32> to vector<8x4xf32>
    %c0_13 = arith.constant 0 : index
    %c0_14 = arith.constant 0 : index
    %25 = vector.load %arg4[%c0_13, %c0_14] : memref<8x4xf32, #tpu.memory_space<vmem>>, vector<8x4xf32>
    tpu.vector_store %arg4[%c0_13, %c0_14], %24 {strides = array<i32>} : memref<8x4xf32, #tpu.memory_space<vmem>>, vector<8x4xf32>,
    return
  }
  func.func @transform_0(%arg0: i32) -> (i32, i32) {
    %c0_i32 = arith.constant 0 : i32
    %c0_i32_0 = arith.constant 0 : i32
    return %arg0, %c0_i32 : i32, i32
  }
  func.func @transform_1(%arg0: i32) -> (i32, i32) {
    %c0_i32 = arith.constant 0 : i32
    %c0_i32_0 = arith.constant 0 : i32
    %c0_i32_1 = arith.constant 0 : i32
    return %c0_i32, %c0_i32_0 : i32, i32
  }
  func.func @transform_2(%arg0: i32) -> (i32, i32) {
    %c0_i32 = arith.constant 0 : i32
    %c0_i32_0 = arith.constant 0 : i32
    %c0_i32_1 = arith.constant 0 : i32
    return %c0_i32, %c0_i32_0 : i32, i32
  }
  func.func @transform_3(%arg0: i32) -> (i32, i32) {
    %c0_i32 = arith.constant 0 : i32
    %c0_i32_0 = arith.constant 0 : i32
    return %arg0, %c0_i32 : i32, i32
  }
}

</mosaic_0001>

<bundles_post_ra>
// kernel: policy_network_forward.1
= control target key start
LH: loop header
LB: loop body
LE: loop exit
PB: predicated region body
PF: predicated region fallthrough
CT: control target
= control target key end

     0   :  { %8 = vsyncpa [#allocation3], 0  ;;  %s569_s0 = inlined_call_operand.vmem [shape: f32[8,8], index: 0, kind: input, shape index: {}]   ;;  %s570_s1 = inlined_call_operand.hbm [shape: f32[16,128], index: 1, kind: input, shape index: {}]   ;;  %s571_s2 = inlined_call_operand.hbm [shape: bf16[256,128], index: 2, kind: input, shape index: {}]   ;;  %s572_s3 = inlined_call_operand.vmem [shape: f32[8,4], index: 3, kind: output, shape index: {}]  }
   0x1   :  { %9 = vsyncpa [#allocation5], 0  ;;  %s488_s12 = smov [#allocation2]   ;;  %s440_s16 = scalar_lea.hbm %s570_s1, 256 }
   0x2   :  { %s17_s13 = sshll.u32 %s488_s12, 4  ;;  %p441_p0 = scmp.ne.s32.totalorder %s570_s1, %s440_s16  ;;  %s18_s13 = int_to_ptr.vmem [resolvable:$true] %s17_s13 }
   0x3   :  { %p444_p1 = scmp.lt.u32.totalorder %s440_s16, %s570_s1 }
   0x5   :  { %p446_p2 = pnand %p444_p1, %p441_p0 }
   0x7   :  { %449 = shalt.err (!%p446_p2)
}
   0x8   :  { %s450_s21 = scalar_lea.vmem %s18_s13, 256  ;;  %p455_p4 = scmp.lt.s32.totalorder %s18_s13, %s18_s13 }
   0x9   :  { %p451_p3 = scmp.ne.s32.totalorder %s18_s13, %s450_s21  ;;  %p456_p5 = scmp.lt.s32.totalorder %s450_s21, %s450_s21 }
   0xb   :  { %p457_p6 = por %p456_p5, %p455_p4 }
   0xd   :  { %p458_p7 = pnand %p457_p6, %p451_p3 }
   0xf   :  { %461 = shalt.err (!%p458_p7)
}
  0x10   :  { %s489_s22 = smov 128   ;;  %s490_s23 = smov 8  }
  0x11   :  { %23 = dma.hbm_to_vmem [thread:$0]  %s570_s1, 256, %s18_s13, [#allocation3], %s489_s22, %s489_s22, %s490_s23  }
  0x12   :  { %s491_s26 = smov [#allocation4]   ;;  %s462_s30 = scalar_lea.hbm %s571_s2, 2048 }
  0x13   :  { %s29_s27 = sshll.u32 %s491_s26, 4  ;;  %p463_p8 = scmp.ne.s32.totalorder %s571_s2, %s462_s30  ;;  %s30_s27 = int_to_ptr.vmem [resolvable:$true] %s29_s27 }
  0x14   :  { %p466_p9 = scmp.lt.u32.totalorder %s462_s30, %s571_s2 }
  0x16   :  { %p468_p10 = pnand %p466_p9, %p463_p8 }
  0x18   :  { %471 = shalt.err (!%p468_p10)
}
  0x19   :  { %s472_s8 = scalar_lea.vmem %s30_s27, 2048  ;;  %p477_p12 = scmp.lt.s32.totalorder %s30_s27, %s30_s27 }
  0x1a   :  { %p473_p11 = scmp.ne.s32.totalorder %s30_s27, %s472_s8  ;;  %p478_p13 = scmp.lt.s32.totalorder %s472_s8, %s472_s8 }
  0x1c   :  { %p479_p0 = por %p478_p13, %p477_p12 }
  0x1e   :  { %p480_p1 = pnand %p479_p0, %p473_p11 }
  0x20   :  { %483 = shalt.err (!%p480_p1)
}
  0x21   :  { %s492_s1 = smov 64   ;;  %s493_s9 = smov 4  }
  0x22   :  { %35 = dma.hbm_to_vmem [thread:$0]  %s571_s2, 2048, %s30_s27, [#allocation5], %s492_s1, %s492_s1, %s493_s9  }
  0x23   :  { %484 = dma.done.wait [#allocation3], 256  }
  0x24   :  { %485 = vsyncadd [#allocation3], 4294967040 }
  0x25   :  { %486 = dma.done.wait [#allocation5], 2048  }
  0x26   :  { %487 = vsyncadd [#allocation5], 4294965248  ;;  %v494_v0 = vmov 0.0   ;;  %vm495_vm0 = vmmov 0   ;;  %v45_v1 = vld [vmem:[#allocation2] sm:$0xff]  ;;  %vm90_vm1 = vcmask 1043456  }
  0x27   :  { %370 = vmatprep.subr.bf16.mxu0 %v494_v0  ;;  %372 = vmatprep.mubr.msk.bf16.mxu0 %vm495_vm0, %v494_v0  ;;  %v43_v2 = vld [vmem:[%s569_s0] sm:$0xff]  ;;  %v46_v3 = vpack.c.bf16 %v45_v1, %v45_v1  ;;  %v424_v4 = vld [vmem:[#allocation4] sm:$0xff]   ;;  %v425_v7 = vld [vmem:[#allocation4 + $0x8] sm:$0xff]   ;;  %vm86_vm2 = vcmask 64512   ;;  %vm322_vm3 = vcmask 31744  }
  0x28   :  { %376 = vmatprep.subr.bf16.mxu1 %v494_v0  ;;  %392 = vmatprep.mubr.msk.bf16.mxu1 %vm495_vm0, %v494_v0  ;;  %v44_v6 = vpack.c.bf16 %v43_v2, %v43_v2  ;;  %v426_v8 = vld [vmem:[#allocation4 + $0x10] sm:$0xff]   ;;  %v427_v9 = vld [vmem:[#allocation4 + $0x18] sm:$0xff]   ;;  %v428_v10 = vld [vmem:[#allocation4 + $0x20] sm:$0xff]  }
  0x29   :  { %v92_v5 = vsel %vm90_vm1, %v46_v3, 0  ;;  %377 = vmatpush3.bf16.msra.mxu1 %v424_v4  ;;  %v429_v11 = vld [vmem:[#allocation4 + $0x28] sm:$0xff]   ;;  %v430_v12 = vld [vmem:[#allocation4 + $0x30] sm:$0xff]   ;;  %v431_v13 = vld [vmem:[#allocation4 + $0x38] sm:$0xff]  }
  0x2a   :  { %371 = vmatpush3.bf16.msra.mxu0 %v92_v5  ;;  %378 = vmatprep.subr.bf16.mxu1 %v494_v0  ;;  %v432_v14 = vld [vmem:[#allocation4 + $0x40] sm:$0xff]   ;;  %v433_v15 = vld [vmem:[#allocation4 + $0x48] sm:$0xff]   ;;  %v434_v16 = vld [vmem:[#allocation4 + $0x50] sm:$0xff]  }
  0x2b   :  { %396 = vmatprep.subr.bf16.mxu0 %v494_v0  ;;  %v435_v17 = vld [vmem:[#allocation4 + $0x58] sm:$0xff]   ;;  %v436_v18 = vld [vmem:[#allocation4 + $0x60] sm:$0xff]   ;;  %v437_v19 = vld [vmem:[#allocation4 + $0x68] sm:$0xff]  }
  0x2c   :  { %v330_v20 = vld [vmem:[#allocation2 + $0x8] ss:$0 sm:$0xff]  ;;  %v438_v28 = vld [vmem:[#allocation4 + $0x70] sm:$0xff]   ;;  %v332_v30 = vld [vmem:[#allocation2 + $0x9] ss:$0 sm:$0xff] }
  0x2d   :  { %373 = vmatmul.mubr.msk.bf16.vlgmr.msra.gmra.mrb[0].mxu0 %vm86_vm2, %v44_v6  ;;  %379 = vmatpush3.bf16.msra.mxu1 %v425_v7  ;;  %v439_v29 = vld [vmem:[#allocation4 + $0x78] sm:$0xff]  }
  0x2e   :  { %380 = vmatprep.subr.bf16.mxu1 %v494_v0  ;;  %412 = vmatprep.mubr.msk.bf16.mxu0 %vm495_vm0, %v494_v0  ;;  %v341_v38 = vld [vmem:[#allocation2 + $0xa] ss:$0 sm:$0xff] }
  0x2f   :  { %397 = vmatpush3.bf16.msra.mxu0 %v432_v14 }
  0x30   :  { %398 = vmatprep.subr.bf16.mxu0 %v494_v0 }
  0x31   :  { %381 = vmatpush3.bf16.msra.mxu1 %v426_v8 }
  0x32   :  { %382 = vmatprep.subr.bf16.mxu1 %v494_v0 }
  0x33   :  { %399 = vmatpush3.bf16.msra.mxu0 %v433_v15 }
  0x34   :  { %400 = vmatprep.subr.bf16.mxu0 %v494_v0 }
  0x35   :  { %383 = vmatpush3.bf16.msra.mxu1 %v427_v9 }
  0x36   :  { %384 = vmatprep.subr.bf16.mxu1 %v494_v0 }
  0x37   :  { %401 = vmatpush3.bf16.msra.mxu0 %v434_v16 }
  0x38   :  { %402 = vmatprep.subr.bf16.mxu0 %v494_v0 }
  0x39   :  { %385 = vmatpush3.bf16.msra.mxu1 %v428_v10 }
  0x3a   :  { %386 = vmatprep.subr.bf16.mxu1 %v494_v0 }
  0x3b   :  { %403 = vmatpush3.bf16.msra.mxu0 %v435_v17 }
  0x3c   :  { %404 = vmatprep.subr.bf16.mxu0 %v494_v0 }
  0x3d   :  { %387 = vmatpush3.bf16.msra.mxu1 %v429_v11 }
  0x3e   :  { %388 = vmatprep.subr.bf16.mxu1 %v494_v0 }
  0x3f   :  { %405 = vmatpush3.bf16.msra.mxu0 %v436_v18 }
  0x40   :  { %406 = vmatprep.subr.bf16.mxu0 %v494_v0 }
  0x41   :  { %389 = vmatpush3.bf16.msra.mxu1 %v430_v12 }
  0x42   :  { %390 = vmatprep.subr.bf16.mxu1 %v494_v0 }
  0x43   :  { %407 = vmatpush3.bf16.msra.mxu0 %v437_v19 }
  0x44   :  { %408 = vmatprep.subr.bf16.mxu0 %v494_v0 }
  0x45   :  { %391 = vmatpush3.bf16.msra.mxu1 %v431_v13 }
  0x47   :  { %409 = vmatpush3.bf16.msra.mxu0 %v438_v28 }
  0x48   :  { %410 = vmatprep.subr.bf16.mxu0 %v494_v0 }
  0x4b   :  { %411 = vmatpush3.bf16.msra.mxu0 %v439_v29 }
 0x100   :  { %v128_v21 = vpop.f32.mrb[0].mxu0 }
 0x101   :  { %v129_v22 = vadd.f32 %v330_v20, %v128_v21  ;;  %v374_v23 = vpop.f32.mrb[1].mxu0 }
 0x102   :  { %v131_v24 = vpop.f32.mrb[2].mxu0 }
 0x103   :  { %v134_v25 = vmax.f32 %v129_v22, 0.0  ;;  %v375_v26 = vpop.f32.mrb[3].mxu0 }
 0x105   :  { %v135_v27 = vpack.c.bf16 %v134_v25, %v134_v25 }
 0x107   :  { %393 = vmatmul.mubr.bf16.vlgmr.msra.gmra.mrb[0].mxu1 %v135_v27 }
 0x1da   :  { %v222_v31 = vpop.f32.mrb[0].mxu1 }
 0x1db   :  { %v223_v32 = vadd.f32 %v332_v30, %v222_v31  ;;  %v394_v33 = vpop.f32.mrb[1].mxu1 }
 0x1dc   :  { %v225_v34 = vpop.f32.mrb[2].mxu1 }
 0x1dd   :  { %v228_v35 = vmax.f32 %v223_v32, 0.0  ;;  %v395_v36 = vpop.f32.mrb[3].mxu1 }
 0x1df   :  { %v229_v37 = vpack.c.bf16 %v228_v35, %v228_v35 }
 0x1e1   :  { %413 = vmatmul.mubr.bf16.vlgmr.msra.gmra.mrb[4].mxu0 %v229_v37 }
 0x2b4   :  { %v316_v39 = vpop.f32.mrb[4].mxu0 }
 0x2b5   :  { %v317_v40 = vadd.f32 %v341_v38, %v316_v39  ;;  %v414_v41 = vpop.f32.mrb[5].mxu0 }
 0x2b6   :  { %v319_v42 = vpop.f32.mrb[6].mxu0 }
 0x2b7   :  { %323 = vst.msk [vmem:[%s572_s3] sm:$0xff] %vm322_vm3, %v317_v40  ;;  %v415_v43 = vpop.f32.mrb[7].mxu0 }
 0x2b8   :  { %328 = vsyncpa [#allocation3], 1 }
 0x2b9   :  { %329 = vsyncpa [#allocation5], 1 }

</bundles_post_ra>
